<compile_context>
chip_gen: v6e
topology: v6e:2x2x1
jax: 0.10.0
libtpu: 0.0.40
codegen_flags: <defaults>
</compile_context>

<pallas_src>
import functools

import jax
import jax.numpy as jnp
from jax.experimental import pallas as pl
from jax.experimental.pallas import tpu as pltpu


# COCO 80-class -> category-id mapping (the `self.transform` tensor).
COCO_TRANSFORM = jnp.array(
    [1, 2, 3, 4, 5, 6, 7, 8, 9, 10, 11, 13, 14, 15, 16, 17, 18, 19, 20, 21,
     22, 23, 24, 25, 27, 28, 31, 32, 33, 34, 35, 36, 37, 38, 39, 40, 41, 42,
     43, 44, 46, 47, 48, 49, 50, 51, 52, 53, 54, 55, 56, 57, 58, 59, 60, 61,
     62, 63, 64, 65, 67, 70, 72, 73, 74, 75, 76, 77, 78, 79, 80, 81, 82, 84,
     85, 86, 87, 88, 89, 90], dtype=jnp.int32)


def _round_up(n, m):
    return ((n + m - 1) // m) * m


def _box_kernel(boxes_ref, scale_ref, out_ref):
    """cxcywh -> xyxy + per-image scaling on a sublane-packed row layout.

    boxes_ref: (block_rows, K_pad) f32 — each image owns 4 consecutive rows
               (cx, cy, w, h); block_rows is a multiple of 8 so every vreg /
               store is sublane-dense and unmasked.
    scale_ref: (block_rows, 1) f32 — per-row scale (img_w, img_h, img_w, img_h).
    out_ref  : (block_rows, K_pad) f32 — rows (x1, y1, x2, y2) * scale.
    """
    x = boxes_ref[...]                                       # (BR, K_pad)
    br = x.shape[0]
    coord = jax.lax.broadcasted_iota(jnp.int32, x.shape, 0) & 3   # row % 4
    is_min = coord < 2

    # Rebuild the duplicated center / wh rows with XLU sublane rotations
    # instead of shipping two tiled copies of the operand from HBM.
    # roll(x, s)[r] = x[(r - s) mod br]; wrap rows are never selected.
    cen_shift = pltpu.roll(x, shift=2, axis=0)               # x[r - 2]
    wh_shift = pltpu.roll(x, shift=br - 2, axis=0)           # x[r + 2]
    centers = jnp.where(is_min, x, cen_shift)                # cx, cy, cx, cy
    wh = jnp.where(is_min, wh_shift, x)                      # w,  h,  w,  h
    half = jnp.where(is_min, jnp.float32(-0.5), jnp.float32(0.5))

    out_ref[...] = (centers + half * wh) * scale_ref[...]


@functools.partial(jax.jit, static_argnames=("k",))
def _postprocess_core(pred_logits, pred_boxes, target_sizes, *, k):
    B, P, C = pred_logits.shape

    # sigmoid is strictly monotonic -> identical selection on raw logits; the
    # full [B, P, C] probability tensor is never materialized.
    # (If the model emits bf16 logits, top_k could run directly on bf16 to
    #  halve the dominant HBM read on v6e/v7x; kept f32 here for bit-parity.)
    logits = pred_logits.astype(jnp.float32)
    topk_vals, topk_idx = jax.lax.top_k(logits.reshape(B, P * C), k)
    scores = jax.nn.sigmoid(topk_vals)                       # only B*k elems
    topk_boxes = topk_idx // C
    labels = topk_idx % C
    coco_labels = jnp.take(COCO_TRANSFORM, labels)

    # Gather the k selected boxes BEFORE the kernel: only [B, 4, K_pad] flows
    # through Pallas instead of all P proposals.
    sel = jnp.take_along_axis(pred_boxes.astype(jnp.float32),
                              topk_boxes[:, :, None], axis=1)        # [B,k,4]

    rows = B * 4
    K_pad = _round_up(k, 128)
    # Sublane-dense blocks (multiple of 8 rows); keep 2 parallel grid steps
    # when the batch allows so both v7x TensorCores get work.
    if rows >= 16:
        n_steps = 2
        block_rows = _round_up(rows, 16) // 2
    else:
        n_steps = 1
        block_rows = _round_up(rows, 8)
    rows_pad = n_steps * block_rows

    boxes_rows = jnp.transpose(sel, (0, 2, 1)).reshape(rows, k)      # [4B, k]
    boxes_rows = jnp.pad(boxes_rows, ((0, rows_pad - rows), (0, K_pad - k)))

    img_h = target_sizes[:, 0].astype(jnp.float32)
    img_w = target_sizes[:, 1].astype(jnp.float32)
    scale_rows = jnp.stack([img_w, img_h, img_w, img_h], axis=1).reshape(rows, 1)
    scale_rows = jnp.pad(scale_rows, ((0, rows_pad - rows), (0, 0)))

    out = pl.pallas_call(
        _box_kernel,
        out_shape=jax.ShapeDtypeStruct((rows_pad, K_pad), jnp.float32),
        grid=(n_steps,),
        in_specs=[
            pl.BlockSpec((block_rows, K_pad), lambda i: (i, 0)),
            pl.BlockSpec((block_rows, 1), lambda i: (i, 0)),
        ],
        out_specs=pl.BlockSpec((block_rows, K_pad), lambda i: (i, 0)),
        compiler_params=pltpu.CompilerParams(
            dimension_semantics=("parallel",)),
    )(boxes_rows, scale_rows)

    boxes = jnp.transpose(out[:rows, :k].reshape(B, 4, k), (0, 2, 1))  # [B,k,4]
    return scores, coco_labels, boxes


def postprocess(pred_logits, pred_boxes, target_sizes, topk=100):
    """JAX/Pallas equivalent of PostProcess.forward (nms=False path).

    Note: selection runs on raw logits (monotonic top-k). For |logit| >~ 17
    f32 sigmoid saturates, so tie-breaking among saturated scores can differ
    from the PyTorch reference; scores/boxes themselves remain valid.
    """
    B, P, C = pred_logits.shape
    assert len(pred_logits) == len(target_sizes)
    assert target_sizes.shape[1] == 2
    k = min(topk, P * C)
    scores, labels, boxes = _postprocess_core(
        pred_logits, pred_boxes, target_sizes, k=k)
    # TODO(synk): nms=True branch (torchvision.ops.batched_nms) not implemented.
    return [{'scores': scores[i], 'labels': labels[i], 'boxes': boxes[i]}
            for i in range(B)]


def _reference_postprocess(pred_logits, pred_boxes, target_sizes, topk=100):
    """Pure-JAX reference mirroring the PyTorch code order exactly."""
    B, P, C = pred_logits.shape
    prob = jax.nn.sigmoid(pred_logits.astype(jnp.float32))
    k = min(topk, P * C)
    scores, topk_idx = jax.lax.top_k(prob.reshape(B, -1), k)
    topk_boxes = topk_idx // C
    labels = topk_idx % C
    cx, cy, w, h = jnp.split(pred_boxes.astype(jnp.float32), 4, axis=-1)
    boxes = jnp.concatenate(
        [cx - 0.5 * w, cy - 0.5 * h, cx + 0.5 * w, cy + 0.5 * h], axis=-1)
    boxes = jnp.take_along_axis(boxes, topk_boxes[:, :, None], axis=1)
    img_h = target_sizes[:, 0].astype(jnp.float32)
    img_w = target_sizes[:, 1].astype(jnp.float32)
    scale = jnp.stack([img_w, img_h, img_w, img_h], axis=1)        # [B, 4]
    boxes = boxes * scale[:, None, :]
    coco_labels = jnp.take(COCO_TRANSFORM, labels)
    return scores, coco_labels, boxes


if __name__ == "__main__":
    key = jax.random.PRNGKey(0)
    k1, k2 = jax.random.split(key)

    B, P, C = 2, 32, 16          # batch, num_proposals, num_classes (<=80)
    raw = jax.random.normal(k1, (B, P, C), dtype=jnp.float32)
    # Quantize logits to a coarse grid so sigmoid cannot collapse two distinct
    # logits to the same float (keeps rank/tie structure identical between
    # "top-k on logits" and the reference "top-k on probabilities").
    pred_logits = jnp.round(raw * 1024.0) / 1024.0
    # boxes in normalized cxcywh, roughly in [0, 1]
    pred_boxes = jax.random.uniform(k2, (B, P, 4), dtype=jnp.float32,
                                    minval=0.1, maxval=0.9)
    target_sizes = jnp.array([[480, 640], [320, 512]], dtype=jnp.int32)

    results = postprocess(pred_logits, pred_boxes, target_sizes, topk=100)
    for r in results:
        jax.block_until_ready(r['scores'])
        jax.block_until_ready(r['labels'])
        jax.block_until_ready(r['boxes'])

    # correctness check against pure-JAX reference (PyTorch op order)
    ref_scores, ref_labels, ref_boxes = _reference_postprocess(
        pred_logits, pred_boxes, target_sizes, topk=100)
    got_scores = jnp.stack([r['scores'] for r in results])
    got_labels = jnp.stack([r['labels'] for r in results])
    got_boxes = jnp.stack([r['boxes'] for r in results])
    assert jnp.allclose(got_scores, ref_scores, atol=1e-5, rtol=1e-5)
    assert jnp.array_equal(got_labels, ref_labels)
    assert jnp.allclose(got_boxes, ref_boxes, atol=1e-3, rtol=1e-5)

    print("KERNEL_OK")
</pallas_src>

<mosaic_0001>
module attributes {stable_mosaic.version = 11 : i64} {
  func.func @_box_kernel(%arg0: i32, %arg1: memref<8x128xf32, #tpu.memory_space<vmem>>, %arg2: memref<8x1xf32, #tpu.memory_space<vmem>>, %arg3: memref<8x128xf32, #tpu.memory_space<vmem>>) attributes {dimension_semantics = [#tpu.dimension_semantics<parallel>], iteration_bounds = array<i64: 1>, scalar_prefetch = 0 : i64, scratch_operands = 0 : i64, tpu.core_type = #tpu.core_type<tc>, window_params = [{transform_indices = @transform_0, window_bounds = array<i64: 8, 128>}, {transform_indices = @transform_1, window_bounds = array<i64: 8, 1>}, {transform_indices = @transform_2, window_bounds = array<i64: 8, 128>}]} {
    %c0 = arith.constant 0 : index
    %c0_0 = arith.constant 0 : index
    %0 = vector.load %arg1[%c0, %c0_0] : memref<8x128xf32, #tpu.memory_space<vmem>>, vector<8x128xf32>
    %1 = tpu.iota {dimensions = array<i32: 0>} : vector<8x128xi32>
    %c3_i32 = arith.constant 3 : i32
    %2 = vector.broadcast %c3_i32 : i32 to vector<8x128xi32>
    %3 = arith.andi %1, %2 : vector<8x128xi32>
    %c2_i32 = arith.constant 2 : i32
    %4 = vector.broadcast %c2_i32 : i32 to vector<8x128xi32>
    %5 = arith.cmpi slt, %3, %4 : vector<8x128xi32>
    %c2_i32_1 = arith.constant 2 : i32
    %6 = tpu.dynamic_rotate %0 by %c2_i32_1 dim 0 : vector<8x128xf32>, i32 -> vector<8x128xf32>
    %c6_i32 = arith.constant 6 : i32
    %7 = tpu.dynamic_rotate %0 by %c6_i32 dim 0 : vector<8x128xf32>, i32 -> vector<8x128xf32>
    %8 = arith.select %5, %0, %6 : vector<8x128xi1>, vector<8x128xf32>
    %9 = arith.select %5, %7, %0 : vector<8x128xi1>, vector<8x128xf32>
    %cst = arith.constant -5.000000e-01 : f32
    %cst_2 = arith.constant 5.000000e-01 : f32
    %10 = vector.broadcast %cst : f32 to vector<8x128xf32>
    %11 = vector.broadcast %cst_2 : f32 to vector<8x128xf32>
    %12 = arith.select %5, %10, %11 : vector<8x128xi1>, vector<8x128xf32>
    %13 = arith.mulf %12, %9 : vector<8x128xf32>
    %14 = arith.addf %8, %13 : vector<8x128xf32>
    %c0_3 = arith.constant 0 : index
    %c0_4 = arith.constant 0 : index
    %15 = vector.load %arg2[%c0_3, %c0_4] : memref<8x1xf32, #tpu.memory_space<vmem>>, vector<8x1xf32>
    %16 = vector.broadcast %15 : vector<8x1xf32> to vector<8x128xf32>
    %17 = arith.mulf %14, %16 : vector<8x128xf32>
    %c0_5 = arith.constant 0 : index
    %c0_6 = arith.constant 0 : index
    %18 = vector.load %arg3[%c0_5, %c0_6] : memref<8x128xf32, #tpu.memory_space<vmem>>, vector<8x128xf32>
    tpu.vector_store %arg3[%c0_5, %c0_6], %17 {strides = array<i32>} : memref<8x128xf32, #tpu.memory_space<vmem>>, vector<8x128xf32>,
    return
  }
  func.func @transform_0(%arg0: i32) -> (i32, i32) {
    %c0_i32 = arith.constant 0 : i32
    %c0_i32_0 = arith.constant 0 : i32
    return %arg0, %c0_i32 : i32, i32
  }
  func.func @transform_1(%arg0: i32) -> (i32, i32) {
    %c0_i32 = arith.constant 0 : i32
    %c0_i32_0 = arith.constant 0 : i32
    return %arg0, %c0_i32 : i32, i32
  }
  func.func @transform_2(%arg0: i32) -> (i32, i32) {
    %c0_i32 = arith.constant 0 : i32
    %c0_i32_0 = arith.constant 0 : i32
    return %arg0, %c0_i32 : i32, i32
  }
}

</mosaic_0001>

<bundles_post_ra>
// kernel: _postprocess_core.1
= control target key start
LH: loop header
LB: loop body
LE: loop exit
PB: predicated region body
PF: predicated region fallthrough
CT: control target
= control target key end

     0   :  { %s99_s0 = inlined_call_operand.vmem [shape: f32[8,128], index: 0, kind: input, shape index: {}]   ;;  %s100_s1 = inlined_call_operand.vmem [shape: f32[8,1], index: 1, kind: input, shape index: {}]   ;;  %s101_s2 = inlined_call_operand.hbm [shape: f32[8,128], index: 2, kind: output, shape index: {}]  }
   0x1   :  { %v24_v0 = vld [vmem:[%s100_s1] sm:$0xff] }
   0x2   :  { %7 = vsyncpa [#allocation3], 0  ;;  %v72_v1 = vmov 0   ;;  %v13_v2 = vlaneseq  ;;  %v12_v4 = vld [vmem:[%s99_s0] sm:$0xff]  ;;  %v73_v9 = vmov 0.5   ;;  %s74_s1 = smov [#allocation2]  }
   0x3   :  { %49 = vset.pattern.permute.xlu0 %v72_v1  ;;  %v18_v6 = vrot.slane %v12_v4, 2  ;;  %v17_v7 = vrot.slane %v12_v4, 6  ;;  %s38_s13 = sshll.u32 %s74_s1, 4  ;;  %s39_s13 = int_to_ptr.vmem [resolvable:$true] %s38_s13 }
   0x4   :  { %27 = vperm.xlu0 %49, %v24_v0   ;;  %v14_v3 = vshrl.u32 %v13_v2, 7  ;;  %s50_s14 = scalar_lea.vmem %s39_s13, 128  ;;  %p55_p1 = scmp.lt.s32.totalorder %s39_s13, %s39_s13 }
   0x5   :  { %p51_p0 = scmp.ne.s32.totalorder %s39_s13, %s50_s14  ;;  %p56_p2 = scmp.lt.s32.totalorder %s50_s14, %s50_s14 }
   0x6   :  { %v15_v5 = vand.u32 3, %v14_v3 }
   0x7   :  { %p57_p3 = por %p56_p2, %p55_p1 }
   0x8   :  { %vm16_vm0 = vcmp.lt.s32.totalorder %v15_v5, 2 }
   0x9   :  { %v20_v8 = vsel %vm16_vm0, %v18_v6, %v12_v4  ;;  %v21_v10 = vsel %vm16_vm0, -0.5, %v73_v9  ;;  %v19_v12 = vsel %vm16_vm0, %v12_v4, %v17_v7  ;;  %p58_p4 = pnand %p57_p3, %p51_p0 }
   0xa   :  { %v22_v11 = vmul.f32 %v21_v10, %v20_v8 }
   0xc   :  { %v23_v13 = vadd.f32 %v22_v11, %v19_v12 }
  0x7f   :  { %v28_v14 = vpop.permute.xlu0 %27 }
  0x80   :  { %v30_v15 = vmul.f32 %v28_v14, %v23_v13 }
  0x82   :  { %31 = vst [vmem:[#allocation2] sm:$0xff] %v30_v15 }
  0x83   :  { %61 = shalt.err (!%p58_p4)
}
  0x84   :  { %41 = dma.vmem_to_hbm [thread:$0]  %s39_s13, 128, %s101_s2, [#allocation3]  }
  0x85   :  { %70 = dma.done.wait [#allocation3], 128  }
  0x86   :  { %71 = vsyncadd [#allocation3], 4294967168 }
  0x87   :  { %45 = vsyncpa [#allocation3], 1 }

</bundles_post_ra>
